<compile_context>
chip_gen: v6e
topology: v6e:2x2x1
jax: 0.10.0
libtpu: 0.0.40
codegen_flags: <defaults>
</compile_context>

<pallas_src>
import math

import jax
import jax.numpy as jnp
import numpy as np
from jax.experimental import pallas as pl
from jax.experimental.pallas import tpu as pltpu


def nearest_power_of_two(x: int, round_up: bool = False) -> int:
    return 1 << (math.ceil(math.log2(x)) if round_up else math.floor(math.log2(x)))


def _vmem_capacity_bytes() -> int:
    """Per-core VMEM capacity; conservative fallback if the query is unavailable."""
    try:
        return int(pltpu.get_tpu_info().vmem_capacity_bytes)
    except Exception:
        return 64 * 1024 * 1024  # v7x per-TC size (most restrictive)


def _choose_tile(n: int, cands) -> int:
    """Largest candidate tile that divides n, else the full dimension."""
    for c in cands:
        if n >= c and n % c == 0:
            return c
    return n


# ---------------------------------------------------------------------------
# Stage 1: projection matmul  (M, C) @ (C, N) -> (M, N)
# ---------------------------------------------------------------------------
def _matmul_kernel(a_ref, b_ref, o_ref, acc_ref):
    @pl.when(pl.program_id(2) == 0)
    def _():
        acc_ref[...] = jnp.zeros_like(acc_ref)

    # in-kernel cast of the activation tile (hidden under the MXU) -- no separate
    # wrapper-side cast pass over x in HBM.
    a = a_ref[...].astype(jnp.bfloat16)
    acc_ref[...] += jnp.dot(a, b_ref[...], preferred_element_type=jnp.float32)

    @pl.when(pl.program_id(2) == pl.num_programs(2) - 1)
    def _():
        o_ref[...] = acc_ref[...].astype(o_ref.dtype)


def _matmul(a, b, out_dtype):
    M, C = a.shape
    _, N = b.shape
    tm = _choose_tile(M, (1024, 512, 256, 128))
    tn = _choose_tile(N, (512, 256, 128))
    tc = _choose_tile(C, (512, 256, 128))
    return pl.pallas_call(
        _matmul_kernel,
        out_shape=jax.ShapeDtypeStruct((M, N), out_dtype),
        grid=(M // tm, N // tn, C // tc),
        in_specs=[
            pl.BlockSpec((tm, tc), lambda i, j, k: (i, k)),
            pl.BlockSpec((tc, tn), lambda i, j, k: (k, j)),
        ],
        out_specs=pl.BlockSpec((tm, tn), lambda i, j, k: (i, j)),
        scratch_shapes=[pltpu.VMEM((tm, tn), jnp.float32)],
        compiler_params=pltpu.CompilerParams(
            dimension_semantics=("parallel", "parallel", "arbitrary"),
            vmem_limit_bytes=32 * 1024 * 1024,
        ),
    )(a, b)


# ---------------------------------------------------------------------------
# Stage 2: even-tap causal convolution as ONE fused Toeplitz MXU matmul per step
# ---------------------------------------------------------------------------
def precompute_even_toeplitz(stu_filters):
    """Interleaved even-tap lower-triangular Toeplitz, shape (L, L*K), bf16.

    T[q, s*K + j] = stu_filters[q - s, j] if (q - s) >= 0 and even, else 0.
    Parameter-only: compute once at module init and reuse across forwards.
    """
    L, K = stu_filters.shape
    lag = jnp.arange(L)[:, None] - jnp.arange(L)[None, :]              # (L, L)
    mask = (lag >= 0) & (lag % 2 == 0)
    vals = stu_filters.astype(jnp.float32)[jnp.clip(lag, 0, L - 1)]    # (L, L, K)
    t = jnp.where(mask[:, :, None], vals, 0.0)
    return t.reshape(L, L * K).astype(jnp.bfloat16)


def _stu_conv_kernel(xp_ref, t_ref, mf_ref, o_ref, acc_ref):
    """Per grid step (bblk, dj, qi, si):

    xp_ref : (TB, TS, TD)   bf16  x_proj source-time tile (batch block, d-tile)
    t_ref  : (TQ, TS*K)     bf16  interleaved even-tap Toeplitz tile (qi, si)
    mf_ref : (K, TD)        bf16  2 * M_filters d-tile
    o_ref  : (TB, TQ, TD)         output tile
    acc_ref: (TB, TQ, TD)   f32   VMEM accumulator, resident across si
    """
    qi = pl.program_id(2)
    si = pl.program_id(3)

    @pl.when(si == 0)
    def _():
        acc_ref[...] = jnp.zeros_like(acc_ref)

    # Causality: Toeplitz blocks with si > qi are identically zero -> skip compute
    # (their DMAs are already elided by the clamped index_maps).
    @pl.when(si <= qi)
    def _():
        TB, TS, TD = xp_ref.shape
        K = mf_ref.shape[0]
        t = t_ref[...]                                             # (TQ, TS*K) bf16
        # hoisted broadcast of the filter mixing weights (reused for all TB batches)
        mf_b = jnp.broadcast_to(mf_ref[...][None, :, :], (TS, K, TD))
        for b in range(TB):                                        # small & static
            # fused RHS: rhs[s*K + j, d] = xp[s, d] * (2*M_filters)[j, d]   (bf16 VPU)
            rhs = (xp_ref[b][:, None, :] * mf_b).reshape(TS * K, TD)
            # single long-contraction MXU matmul, f32 accumulation
            acc_ref[b] += jnp.dot(t, rhs, preferred_element_type=jnp.float32)

    @pl.when(si == pl.num_programs(3) - 1)
    def _():
        # 2.0 scale already folded into mf -> plain cast + store.
        o_ref[...] = acc_ref[...].astype(o_ref.dtype)


def _pick_conv_tiles(B, L, D, K, budget_bytes, tq_cands):
    """Pick (TB, TQ=TS, TD) under a per-generation VMEM footprint budget."""
    td_opts = [c for c in (512, 256, 128) if D % c == 0] or [D]
    tq_opts = [c for c in tq_cands if L % c == 0] or [L]
    tb_opts = [c for c in (4, 2, 1) if B % c == 0] or [B]

    def footprint(tb, tq, td):
        ts = tq
        t = tq * ts * K * 2          # bf16 Toeplitz tile
        xp = tb * ts * td * 2        # bf16 x_proj tile
        out = tb * tq * td * 4       # output tile (worst case f32)
        mf = K * td * 2
        acc = tb * tq * td * 4       # f32 accumulator (single-buffered)
        rhs = ts * K * td * 2        # in-kernel fused-RHS temporary
        return 2 * (t + xp + out + mf) + acc + 2 * rhs

    for tq in tq_opts:
        for td in td_opts:
            for tb in tb_opts:
                if footprint(tb, tq, td) <= budget_bytes:
                    return tb, tq, td
    return tb_opts[-1], tq_opts[-1], td_opts[-1]


def stu_forward(x, M_inputs, stu_filters, M_filters, toeplitz=None):
    """x: (B, L, D) -> (B, L, D), matching STU.forward (use_approx=True, use_hankel_L=False)."""
    B, L, D = x.shape
    K = M_filters.shape[0]
    out_dtype = x.dtype
    # n = nearest_power_of_two(2L-1, round_up=True) >= 2L-1 -> FFT conv == exact causal conv.
    _ = nearest_power_of_two(2 * L - 1, round_up=True)

    # ---- Stage 1: x_proj = x @ M_inputs (f32 x fed directly, bf16 cast in-kernel) ----
    x_proj = _matmul(
        x.reshape(B * L, D),
        M_inputs.astype(jnp.bfloat16),
        jnp.bfloat16,
    ).reshape(B, L, D)

    # ---- Stage 2 operands ----
    if toeplitz is None:
        toeplitz = precompute_even_toeplitz(stu_filters)      # ideally precomputed at init
    # fold the final (U_plus + U_minus) == 2 * even-conv scale into M_filters (exact)
    mf2 = (2.0 * M_filters.astype(jnp.float32)).astype(jnp.bfloat16)

    # Generation-aware tiling / VMEM limits.
    vmem_cap = _vmem_capacity_bytes()
    if vmem_cap >= 100 * 1024 * 1024:          # v5e / v6e: 128 MiB physical VMEM
        vmem_limit = 96 * 1024 * 1024
        budget = 80 * 1024 * 1024
        tq_cands = (512, 256, 128)
    else:                                       # v7x: 64 MiB per TensorCore
        vmem_limit = 48 * 1024 * 1024
        budget = 40 * 1024 * 1024
        tq_cands = (256, 128)

    TB, TQ, TD = _pick_conv_tiles(B, L, D, K, budget, tq_cands)
    TS = TQ
    grid = (B // TB, D // TD, L // TQ, L // TS)   # src-time (reduction) axis innermost

    out = pl.pallas_call(
        _stu_conv_kernel,
        out_shape=jax.ShapeDtypeStruct((B, L, D), out_dtype),
        grid=grid,
        in_specs=[
            # Causal clamp: for si > qi the block index equals the si == qi one, so the
            # pipeline revisits the resident block and elides the HBM fetch entirely.
            pl.BlockSpec((TB, TS, TD),
                         lambda b, dj, qi, si: (b, jnp.minimum(si, qi), dj)),
            pl.BlockSpec((TQ, TS * K),
                         lambda b, dj, qi, si: (qi, jnp.minimum(si, qi))),
            pl.BlockSpec((K, TD), lambda b, dj, qi, si: (0, dj)),
        ],
        out_specs=pl.BlockSpec((TB, TQ, TD), lambda b, dj, qi, si: (b, qi, dj)),
        scratch_shapes=[pltpu.VMEM((TB, TQ, TD), jnp.float32)],
        compiler_params=pltpu.CompilerParams(
            dimension_semantics=("parallel", "parallel", "parallel", "arbitrary"),
            vmem_limit_bytes=vmem_limit,
        ),
    )(x_proj, toeplitz, mf2)
    return out


if __name__ == "__main__":
    # small config: batch=2, seq_len=8, dim=32, num_eigh=4
    B, L, D, K = 2, 8, 32, 4
    key = jax.random.PRNGKey(0)
    k1, k2, k3, k4 = jax.random.split(key, 4)
    x = jax.random.normal(k1, (B, L, D), jnp.float32)
    M_inputs = jax.random.normal(k2, (D, D), jnp.float32)      # nn.Parameter (d_in, d_out)
    M_filters = jax.random.normal(k3, (K, D), jnp.float32)     # nn.Parameter (K, d_in)
    stu_filters = jax.random.normal(k4, (L, K), jnp.float32)   # spectral filters (seq_len, K)

    # Toeplitz is parameter-only: precompute once ("module init"), reuse per forward.
    toeplitz = jax.block_until_ready(precompute_even_toeplitz(stu_filters))

    out = jax.block_until_ready(stu_forward(x, M_inputs, stu_filters, M_filters, toeplitz))
    out = np.asarray(out)

    # reference: direct causal conv (same math as the module's FFT convolve()), f32
    xn, Mi, Mf, fil = map(np.asarray, (x, M_inputs, M_filters, stu_filters))
    x_proj = xn @ Mi
    phi = fil @ Mf
    ref = np.zeros((B, L, D), np.float32)
    for t in range(L):
        for kk in range(t + 1):
            ref[:, t, :] += (1.0 + (-1.0) ** kk) * phi[kk] * x_proj[:, t - kk, :]

    # kernel uses bf16 MXU operands with f32 accumulation -> bf16-appropriate tolerances
    err = np.abs(out - ref)
    tol = 5e-2 * np.abs(ref) + 5e-2 * np.max(np.abs(ref)) + 5e-2
    assert np.all(err <= tol), f"max abs err = {float(err.max())}"
    rel = np.linalg.norm(out - ref) / max(float(np.linalg.norm(ref)), 1e-6)
    assert rel < 2e-2, f"relative Frobenius error = {rel}"

    print("KERNEL_OK")
</pallas_src>

<mosaic_0001>
module attributes {stable_mosaic.version = 11 : i64} {
  func.func @_matmul_kernel(%arg0: i32, %arg1: i32, %arg2: i32, %arg3: memref<16x32xf32, #tpu.memory_space<vmem>>, %arg4: memref<32x32xbf16, #tpu.memory_space<vmem>>, %arg5: memref<16x32xbf16, #tpu.memory_space<vmem>>, %arg6: memref<16x32xf32, #tpu.memory_space<vmem>>) attributes {dimension_semantics = [#tpu.dimension_semantics<parallel>, #tpu.dimension_semantics<parallel>, #tpu.dimension_semantics<arbitrary>], iteration_bounds = array<i64: 1, 1, 1>, scalar_prefetch = 0 : i64, scratch_operands = 1 : i64, tpu.core_type = #tpu.core_type<tc>, window_params = [{transform_indices = @transform_0, window_bounds = array<i64: 16, 32>}, {transform_indices = @transform_1, window_bounds = array<i64: 32, 32>}, {transform_indices = @transform_2, window_bounds = array<i64: 16, 32>}]} {
    %c0_i32 = arith.constant 0 : i32
    %0 = arith.cmpi eq, %arg2, %c0_i32 : i32
    %1 = arith.extui %0 : i1 to i32
    %c0_i32_0 = arith.constant 0 : i32
    %2 = arith.cmpi ne, %1, %c0_i32_0 : i32
    scf.if %2 {
      %cst_10 = arith.constant 0.000000e+00 : f32
      %13 = vector.broadcast %cst_10 : f32 to vector<16x32xf32>
      %c0_11 = arith.constant 0 : index
      %c0_12 = arith.constant 0 : index
      %14 = vector.load %arg6[%c0_11, %c0_12] : memref<16x32xf32, #tpu.memory_space<vmem>>, vector<16x32xf32>
      tpu.vector_store %arg6[%c0_11, %c0_12], %13 {strides = array<i32>} : memref<16x32xf32, #tpu.memory_space<vmem>>, vector<16x32xf32>,
    } else {
    }
    %c0 = arith.constant 0 : index
    %c0_1 = arith.constant 0 : index
    %3 = vector.load %arg3[%c0, %c0_1] : memref<16x32xf32, #tpu.memory_space<vmem>>, vector<16x32xf32>
    %4 = arith.truncf %3 : vector<16x32xf32> to vector<16x32xbf16>
    %c0_2 = arith.constant 0 : index
    %c0_3 = arith.constant 0 : index
    %5 = vector.load %arg6[%c0_2, %c0_3] : memref<16x32xf32, #tpu.memory_space<vmem>>, vector<16x32xf32>
    %c0_4 = arith.constant 0 : index
    %c0_5 = arith.constant 0 : index
    %6 = vector.load %arg4[%c0_4, %c0_5] : memref<32x32xbf16, #tpu.memory_space<vmem>>, vector<32x32xbf16>
    %cst = arith.constant dense<0.000000e+00> : vector<16x32xf32>
    %7 = tpu.matmul %4, %6, %cst {dimension_numbers = #tpu.dot_dimension_numbers<[1], [0], [0], [1], [0, 0, 1, 1], [], []>} : vector<16x32xbf16>, vector<32x32xbf16>, vector<16x32xf32> -> vector<16x32xf32>
    %8 = arith.addf %5, %7 : vector<16x32xf32>
    %c0_6 = arith.constant 0 : index
    %c0_7 = arith.constant 0 : index
    %9 = vector.load %arg6[%c0_6, %c0_7] : memref<16x32xf32, #tpu.memory_space<vmem>>, vector<16x32xf32>
    tpu.vector_store %arg6[%c0_6, %c0_7], %8 {strides = array<i32>} : memref<16x32xf32, #tpu.memory_space<vmem>>, vector<16x32xf32>,
    %c0_i32_8 = arith.constant 0 : i32
    %10 = arith.cmpi eq, %arg2, %c0_i32_8 : i32
    %11 = arith.extui %10 : i1 to i32
    %c0_i32_9 = arith.constant 0 : i32
    %12 = arith.cmpi ne, %11, %c0_i32_9 : i32
    scf.if %12 {
      %c0_10 = arith.constant 0 : index
      %c0_11 = arith.constant 0 : index
      %13 = vector.load %arg6[%c0_10, %c0_11] : memref<16x32xf32, #tpu.memory_space<vmem>>, vector<16x32xf32>
      %14 = arith.truncf %13 : vector<16x32xf32> to vector<16x32xbf16>
      %c0_12 = arith.constant 0 : index
      %c0_13 = arith.constant 0 : index
      %15 = vector.load %arg5[%c0_12, %c0_13] : memref<16x32xbf16, #tpu.memory_space<vmem>>, vector<16x32xbf16>
      tpu.vector_store %arg5[%c0_12, %c0_13], %14 {strides = array<i32>} : memref<16x32xbf16, #tpu.memory_space<vmem>>, vector<16x32xbf16>,
    } else {
    }
    return
  }
  func.func @transform_0(%arg0: i32, %arg1: i32, %arg2: i32) -> (i32, i32) {
    %c0_i32 = arith.constant 0 : i32
    return %arg0, %arg2 : i32, i32
  }
  func.func @transform_1(%arg0: i32, %arg1: i32, %arg2: i32) -> (i32, i32) {
    %c0_i32 = arith.constant 0 : i32
    return %arg2, %arg1 : i32, i32
  }
  func.func @transform_2(%arg0: i32, %arg1: i32, %arg2: i32) -> (i32, i32) {
    %c0_i32 = arith.constant 0 : i32
    return %arg0, %arg1 : i32, i32
  }
}

</mosaic_0001>

<bundles_post_ra>
// kernel: tpu_custom_call.1
= control target key start
LH: loop header
LB: loop body
LE: loop exit
PB: predicated region body
PF: predicated region fallthrough
CT: control target
= control target key end

     0   :  { %7 = vsyncpa [#allocation4], 0  ;;  %s291_s0 = inlined_call_operand.hbm [shape: f32[16,32], index: 0, kind: input, shape index: {}]   ;;  %s292_s1 = inlined_call_operand.hbm [shape: bf16[32,32], index: 1, kind: input, shape index: {}]   ;;  %s293_s2 = inlined_call_operand.hbm [shape: bf16[16,32], index: 2, kind: output, shape index: {}]  }
   0x1   :  { %8 = vsyncpa [#allocation7], 0 }
   0x2   :  { %9 = vsyncpa [#allocation5], 0  ;;  %s247_s9 = smov [#allocation3]  }
   0x3   :  { %s15_s10 = sshll.u32 %s247_s9, 4  ;;  %s16_s10 = int_to_ptr.vmem [resolvable:$true] %s15_s10 }
   0x4   :  { %s189_s11 = scalar_lea.vmem %s16_s10, 256  ;;  %p194_p1 = scmp.lt.s32.totalorder %s16_s10, %s16_s10 }
   0x5   :  { %p190_p0 = scmp.ne.s32.totalorder %s16_s10, %s189_s11  ;;  %p195_p2 = scmp.lt.s32.totalorder %s189_s11, %s189_s11 }
   0x7   :  { %p196_p3 = por %p195_p2, %p194_p1 }
   0x9   :  { %p197_p4 = pnand %p196_p3, %p190_p0 }
   0xb   :  { %200 = shalt.err (!%p197_p4)
}
   0xc   :  { %s248_s12 = smov 128   ;;  %s249_s13 = smov 8  }
   0xd   :  { %21 = dma.hbm_to_vmem [thread:$0]  %s291_s0, 256, %s16_s10, [#allocation4], %s248_s12, %s248_s12, %s249_s13  }
   0xe   :  { %s250_s16 = smov [#allocation6]  }
   0xf   :  { %s27_s17 = sshll.u32 %s250_s16, 4  ;;  %s28_s17 = int_to_ptr.vmem [resolvable:$true] %s27_s17 }
  0x10   :  { %s209_s18 = scalar_lea.vmem %s28_s17, 256  ;;  %p214_p6 = scmp.lt.s32.totalorder %s28_s17, %s28_s17 }
  0x11   :  { %p210_p5 = scmp.ne.s32.totalorder %s28_s17, %s209_s18  ;;  %p215_p7 = scmp.lt.s32.totalorder %s209_s18, %s209_s18 }
  0x13   :  { %p216_p8 = por %p215_p7, %p214_p6 }
  0x15   :  { %p217_p9 = pnand %p216_p8, %p210_p5 }
  0x17   :  { %220 = shalt.err (!%p217_p9)
}
  0x18   :  { %s251_s19 = smov 64   ;;  %s252_s20 = smov 4  }
  0x19   :  { %33 = dma.hbm_to_vmem [thread:$0]  %s292_s1, 256, %s28_s17, [#allocation7], %s251_s19, %s251_s19, %s252_s20  }
  0x1a   :  { %241 = dma.done.wait [#allocation4], 256  }
  0x1b   :  { %242 = vsyncadd [#allocation4], 4294967040 }
  0x1c   :  { %243 = dma.done.wait [#allocation7], 256  }
  0x1d   :  { %244 = vsyncadd [#allocation7], 4294967040  ;;  %vm45_vm0 = vcmask 261120   ;;  %v253_v0 = vmov 0.0   ;;  %vm254_vm1 = vmmov 0   ;;  %v179_v1 = vld [vmem:[#allocation6 + $0x8] sm:$0xff]  }
  0x1e   :  { %162 = vmatprep.subr.bf16.mxu0 %v253_v0  ;;  %166 = vmatprep.mubr.msk.bf16.mxu0 %vm254_vm1, %v253_v0  ;;  %46 = vst.msk [vmem:[#allocation2] sm:$0xff] %vm45_vm0, %v253_v0  ;;  %47 = vst.msk [vmem:[#allocation2 + $0x8] sm:$0xff] %vm45_vm0, %v253_v0  ;;  %v180_v2 = vld [vmem:[#allocation6] sm:$0xff]   ;;  %v48_v3 = vld [vmem:[#allocation3] sm:$0xff]  ;;  %vm131_vm2 = vcmask 257024   ;;  %s255_s0 = smov [#allocation8]  }
  0x1f   :  { %163 = vmatpush3.bf16.msra.mxu0 %v179_v1  ;;  %v49_v4 = vld [vmem:[#allocation3 + $0x8] sm:$0xff]  ;;  %s139_s1 = sshll.u32 %s255_s0, 4  ;;  %s140_s1 = int_to_ptr.vmem [resolvable:$true] %s139_s1 }
  0x20   :  { %164 = vmatprep.subr.bf16.mxu0 %v253_v0  ;;  %v50_v5 = vpack.c.bf16 %v49_v4, %v48_v3  ;;  %s221_s23 = scalar_lea.vmem %s140_s1, 128  ;;  %p226_p11 = scmp.lt.s32.totalorder %s140_s1, %s140_s1 }
  0x21   :  { %p222_p10 = scmp.ne.s32.totalorder %s140_s1, %s221_s23  ;;  %p227_p12 = scmp.lt.s32.totalorder %s221_s23, %s221_s23 }
  0x23   :  { %165 = vmatpush3.bf16.msra.mxu0 %v180_v2  ;;  %p228_p13 = por %p227_p12, %p226_p11 }
  0x25   :  { %v51_v6 = vld [vmem:[#allocation2] sm:$0xff]  ;;  %v52_v10 = vld [vmem:[#allocation2 + $0x8] sm:$0xff]  ;;  %p229_p0 = pnand %p228_p13, %p222_p10 }
  0x26   :  { %167 = vmatmul.mubr.msk.bf16.vlgmr.msra.gmra.mxu0 %vm45_vm0, %v50_v5 }
  0xe6   :  { %v107_v7 = vpop.f32.mrf.mxu0 }
  0xe7   :  { %v114_v8 = vadd.f32 %v107_v7, %v51_v6 }
  0xe8   :  { %v168_v9 = vpop.f32.mrf.mxu0 }
  0xe9   :  { %116 = vst.msk [vmem:[#allocation2] sm:$0xff] %vm45_vm0, %v114_v8 }
  0xea   :  { %v110_v11 = vpop.f32.mrf.mxu0 }
  0xeb   :  { %v115_v12 = vadd.f32 %v110_v11, %v52_v10 }
  0xec   :  { %v169_v13 = vpop.f32.mrf.mxu0 }
  0xed   :  { %117 = vst.msk [vmem:[#allocation2 + $0x8] sm:$0xff] %vm45_vm0, %v115_v12 }
  0xf0   :  { %v121_v14 = vld [vmem:[#allocation2] sm:$0xff] }
  0xf1   :  { %v157_v15 = vpack.c.bf16 %v121_v14, %v121_v14 }
  0xf3   :  { %132 = vst.msk [vmem:[#allocation8] sm:$0xf] %vm131_vm2, %v157_v15 }
  0xf4   :  { %v122_v16 = vld [vmem:[#allocation2 + $0x8] sm:$0xff] }
  0xf5   :  { %v158_v17 = vpack.c.bf16 %v122_v16, %v122_v16 }
  0xf7   :  { %133 = vst.msk [vmem:[#allocation8 + $0x4] sm:$0xf] %vm131_vm2, %v158_v17 }
  0xf8   :  { %232 = shalt.err (!%p229_p0)
}
  0xf9   :  { %145 = dma.vmem_to_hbm [thread:$0]  %s140_s1, 128, %s293_s2, [#allocation5], %s251_s19, %s251_s19, %s252_s20  }
  0xfa   :  { %245 = dma.done.wait [#allocation5], 128  }
  0xfb   :  { %246 = vsyncadd [#allocation5], 4294967168 }
  0xfc   :  { %149 = vsyncpa [#allocation4], 1 }
  0xfd   :  { %150 = vsyncpa [#allocation7], 1 }
  0xfe   :  { %151 = vsyncpa [#allocation5], 1 }

</bundles_post_ra>
